<compile_context>
chip_gen: v5e
topology: v5e:2x2
jax: 0.10.0
libtpu: 0.0.40
codegen_flags: <defaults>
</compile_context>

<pallas_src>
import functools

import jax
import jax.numpy as jnp
from jax.experimental import pallas as pl
from jax.experimental.pallas import tpu as pltpu


def _ce_sum_kernel(logits_ref, labels_ref, out_ref, *, ignore_index):
    """One (batch-row, seq-tile) program. Accumulates this batch row's CE sum
    into its (1, 1, 128) per-batch output block (same block across seq tiles)."""
    st = pl.program_id(1)

    @pl.when(st == 0)
    def _():
        out_ref[...] = jnp.zeros_like(out_ref)

    x = logits_ref[0].astype(jnp.float32)     # (V, Ts)  vocab on sublanes
    lab = labels_ref[0]                       # (1, Ts)  int32
    V, Ts = x.shape

    # log-sum-exp over the vocab (sublane) axis
    m = jnp.max(x, axis=0, keepdims=True)                                 # (1, Ts)
    lse = m + jnp.log(jnp.sum(jnp.exp(x - m), axis=0, keepdims=True))     # (1, Ts)

    # gather the logit at the label via select-reduce (no float one-hot mul)
    iota_v = jax.lax.broadcasted_iota(jnp.int32, (V, Ts), 0)              # (V, Ts)
    picked = jnp.sum(jnp.where(iota_v == lab, x, 0.0),
                     axis=0, keepdims=True)                               # (1, Ts)

    # ignore_index positions contribute 0 loss (reduction='none' behavior)
    tok_loss = jnp.where(lab == ignore_index, 0.0, lse - picked)          # (1, Ts)

    # scalar broadcast-add keeps the (1,1,128) output lane-dense (unmasked vst)
    out_ref[...] += jnp.sum(tok_loss)


def _choose_seq_tile(seq_len, vocab, itemsize, *, max_tile_bytes=10 << 20,
                     max_tile_rows=1024):
    """Largest multiple-of-128 divisor of seq_len (capped at max_tile_rows)
    whose double-buffered (V, Ts) tile fits the VMEM budget.  Falls back to
    the full sequence for non-128-divisible S (block == full dim is legal)."""
    if seq_len % 128 != 0:
        return seq_len
    best = 128
    t = 128
    while t <= min(seq_len, max_tile_rows):
        if seq_len % t == 0 and vocab * t * itemsize <= max_tile_bytes:
            best = t
        t += 128
    return best


def change_penalty_loss(logits, labels, *, ignore_index=-1, alpha=10.0,
                        max_changes=3, seq_tile=None):
    """logits: (B, V, S) float32/bfloat16; labels: (B, S) int. Returns scalar."""
    B, V, S = logits.shape
    labels = labels.astype(jnp.int32)

    itemsize = jnp.dtype(logits.dtype).itemsize
    ts = seq_tile if seq_tile is not None else _choose_seq_tile(S, V, itemsize)
    assert S % ts == 0, (S, ts)
    n_seq_tiles = S // ts
    # TODO(synk): for very large vocabularies (V >= ~64K) also tile V with an
    # online log-sum-exp (running max / sum / picked scratch); here each tile
    # holds the full vocab column in VMEM.

    kernel = functools.partial(_ce_sum_kernel, ignore_index=int(ignore_index))

    partials = pl.pallas_call(
        kernel,
        out_shape=jax.ShapeDtypeStruct((B, 1, 128), jnp.float32),
        grid=(B, n_seq_tiles),
        in_specs=[
            # native (B, V, S) layout: no HBM->HBM transpose pass
            pl.BlockSpec((1, V, ts), lambda b, s: (b, 0, s)),
            pl.BlockSpec((1, 1, ts), lambda b, s: (b, 0, s)),
        ],
        # per-batch accumulator: same block across the seq-tile ('arbitrary') axis
        out_specs=pl.BlockSpec((1, 1, 128), lambda b, s: (b, 0, 0)),
        compiler_params=pltpu.CompilerParams(
            dimension_semantics=("parallel", "arbitrary"),
            vmem_limit_bytes=48 * 1024 * 1024,
        ),
    )(logits, labels.reshape(B, 1, S))

    ce_sum = jnp.sum(partials[:, 0, 0])
    # base_loss.mean() divides by B*S including ignored positions
    # (reduction='none' then .mean()), matching the PyTorch module.
    base_mean = ce_sum / float(B * S)

    # change penalty: labels-only (B*S int32s) -> plain JAX in the wrapper
    changes = (labels[:, 1:] != labels[:, :-1]).astype(jnp.float32)
    penalty = jnp.maximum(changes.sum(axis=1) - float(max_changes), 0.0)
    return base_mean + float(alpha) * penalty.mean()


def _reference_loss(logits, labels, *, ignore_index, alpha, max_changes):
    """Pure-JAX reference mirroring the PyTorch module."""
    x = jnp.transpose(logits, (0, 2, 1)).astype(jnp.float32)   # (B, S, V)
    logp = jax.nn.log_softmax(x, axis=-1)
    lab_safe = jnp.where(labels == ignore_index, 0, labels)
    picked = jnp.take_along_axis(logp, lab_safe[..., None], axis=-1)[..., 0]
    tok = jnp.where(labels == ignore_index, 0.0, -picked)       # (B, S)
    changes = (labels[:, 1:] != labels[:, :-1]).astype(jnp.float32)
    penalty = jnp.maximum(changes.sum(axis=1) - max_changes, 0.0)
    return tok.mean() + alpha * penalty.mean()


if __name__ == "__main__":
    IGNORE = -1
    ALPHA = 10.0
    MAX_CHANGES = 3

    key = jax.random.PRNGKey(0)
    k1, k2, k3, k4 = jax.random.split(key, 4)

    # --- small shape straight from the module spec ---
    B, V, S = 2, 32, 8
    logits = jax.random.normal(k1, (B, V, S), dtype=jnp.float32)
    labels = jax.random.randint(k2, (B, S), 0, V, dtype=jnp.int32)
    labels = labels.at[0, 2].set(IGNORE).at[1, 5].set(IGNORE)

    out = change_penalty_loss(logits, labels, ignore_index=IGNORE,
                              alpha=ALPHA, max_changes=MAX_CHANGES)
    out = jax.block_until_ready(out)
    ref = _reference_loss(logits, labels, ignore_index=IGNORE,
                          alpha=ALPHA, max_changes=MAX_CHANGES)
    ref = jax.block_until_ready(ref)
    assert jnp.allclose(out, ref, rtol=1e-5, atol=1e-5), (out, ref)

    # --- exercise the seq-tiled / accumulator path (multiple s-tiles per row) ---
    B2, V2, S2 = 2, 32, 256
    logits2 = jax.random.normal(k3, (B2, V2, S2), dtype=jnp.float32)
    labels2 = jax.random.randint(k4, (B2, S2), 0, V2, dtype=jnp.int32)
    labels2 = labels2.at[0, 7].set(IGNORE).at[1, 100].set(IGNORE)

    out2 = change_penalty_loss(logits2, labels2, ignore_index=IGNORE,
                               alpha=ALPHA, max_changes=MAX_CHANGES,
                               seq_tile=128)
    out2 = jax.block_until_ready(out2)
    ref2 = _reference_loss(logits2, labels2, ignore_index=IGNORE,
                           alpha=ALPHA, max_changes=MAX_CHANGES)
    ref2 = jax.block_until_ready(ref2)
    assert jnp.allclose(out2, ref2, rtol=1e-5, atol=1e-5), (out2, ref2)

    # --- bf16 path: logits stay bf16 into the kernel, upcast in-kernel ---
    logits3 = logits2.astype(jnp.bfloat16)
    out3 = change_penalty_loss(logits3, labels2, ignore_index=IGNORE,
                               alpha=ALPHA, max_changes=MAX_CHANGES,
                               seq_tile=128)
    out3 = jax.block_until_ready(out3)
    ref3 = _reference_loss(logits3, labels2, ignore_index=IGNORE,
                           alpha=ALPHA, max_changes=MAX_CHANGES)
    ref3 = jax.block_until_ready(ref3)
    assert jnp.allclose(out3, ref3, rtol=2e-3, atol=2e-3), (out3, ref3)

    print("KERNEL_OK")
</pallas_src>

<mosaic_0001>
module attributes {stable_mosaic.version = 11 : i64} {
  func.func @_ce_sum_kernel(%arg0: i32, %arg1: i32, %arg2: memref<1x32x8xf32, #tpu.memory_space<vmem>>, %arg3: memref<1x1x8xi32, #tpu.memory_space<vmem>>, %arg4: memref<1x1x128xf32, #tpu.memory_space<vmem>>) attributes {dimension_semantics = [#tpu.dimension_semantics<parallel>, #tpu.dimension_semantics<arbitrary>], iteration_bounds = array<i64: 2, 1>, scalar_prefetch = 0 : i64, scratch_operands = 0 : i64, tpu.core_type = #tpu.core_type<tc>, window_params = [{transform_indices = @transform_0, window_bounds = array<i64: 1, 32, 8>}, {transform_indices = @transform_1, window_bounds = array<i64: 1, 1, 8>}, {transform_indices = @transform_2, window_bounds = array<i64: 1, 1, 128>}]} {
    %c0_i32 = arith.constant 0 : i32
    %0 = arith.cmpi eq, %arg1, %c0_i32 : i32
    %1 = arith.extui %0 : i1 to i32
    %c0_i32_0 = arith.constant 0 : i32
    %2 = arith.cmpi ne, %1, %c0_i32_0 : i32
    scf.if %2 {
      %cst_17 = arith.constant 0.000000e+00 : f32
      %36 = vector.broadcast %cst_17 : f32 to vector<1x1x128xf32>
      %c0_18 = arith.constant 0 : index
      %c0_19 = arith.constant 0 : index
      %c0_20 = arith.constant 0 : index
      %37 = vector.load %arg4[%c0_18, %c0_19, %c0_20] : memref<1x1x128xf32, #tpu.memory_space<vmem>>, vector<1x1x128xf32>
      tpu.vector_store %arg4[%c0_18, %c0_19, %c0_20], %36 {strides = array<i32>} : memref<1x1x128xf32, #tpu.memory_space<vmem>>, vector<1x1x128xf32>,
    } else {
    }
    %c0 = arith.constant 0 : index
    %c0_1 = arith.constant 0 : index
    %c0_2 = arith.constant 0 : index
    %3 = vector.load %arg2[%c0, %c0_1, %c0_2] : memref<1x32x8xf32, #tpu.memory_space<vmem>>, vector<1x32x8xf32>
    %4 = vector.shape_cast %3 : vector<1x32x8xf32> to vector<32x8xf32>
    %c0_3 = arith.constant 0 : index
    %c0_4 = arith.constant 0 : index
    %c0_5 = arith.constant 0 : index
    %5 = vector.load %arg3[%c0_3, %c0_4, %c0_5] : memref<1x1x8xi32, #tpu.memory_space<vmem>>, vector<1x1x8xi32>
    %6 = vector.shape_cast %5 : vector<1x1x8xi32> to vector<1x8xi32>
    %cst = arith.constant dense<0xFF800000> : vector<8xf32>
    %7 = vector.multi_reduction <maximumf>, %4, %cst [0] : vector<32x8xf32> to vector<8xf32>
    %8 = vector.shape_cast %7 : vector<8xf32> to vector<1x8xf32>
    %9 = vector.broadcast %8 : vector<1x8xf32> to vector<32x8xf32>
    %10 = arith.subf %4, %9 : vector<32x8xf32>
    %11 = math.exp %10 : vector<32x8xf32>
    %cst_6 = arith.constant dense<0.000000e+00> : vector<8xf32>
    %12 = vector.multi_reduction <add>, %11, %cst_6 [0] : vector<32x8xf32> to vector<8xf32>
    %13 = vector.shape_cast %12 : vector<8xf32> to vector<1x8xf32>
    %14 = math.log %13 : vector<1x8xf32>
    %15 = arith.addf %8, %14 : vector<1x8xf32>
    %16 = tpu.iota {dimensions = array<i32: 0>} : vector<32x8xi32>
    %17 = vector.broadcast %6 : vector<1x8xi32> to vector<32x8xi32>
    %18 = arith.cmpi eq, %16, %17 : vector<32x8xi32>
    %cst_7 = arith.constant 0.000000e+00 : f32
    %19 = vector.broadcast %cst_7 : f32 to vector<32x8xf32>
    %20 = arith.select %18, %4, %19 : vector<32x8xi1>, vector<32x8xf32>
    %cst_8 = arith.constant dense<0.000000e+00> : vector<8xf32>
    %21 = vector.multi_reduction <add>, %20, %cst_8 [0] : vector<32x8xf32> to vector<8xf32>
    %22 = vector.shape_cast %21 : vector<8xf32> to vector<1x8xf32>
    %c-1_i32 = arith.constant -1 : i32
    %23 = vector.broadcast %c-1_i32 : i32 to vector<1x8xi32>
    %24 = arith.cmpi eq, %6, %23 : vector<1x8xi32>
    %25 = arith.subf %15, %22 : vector<1x8xf32>
    %cst_9 = arith.constant 0.000000e+00 : f32
    %26 = vector.broadcast %cst_9 : f32 to vector<1x8xf32>
    %27 = arith.select %24, %26, %25 : vector<1x8xi1>, vector<1x8xf32>
    %c0_10 = arith.constant 0 : index
    %c0_11 = arith.constant 0 : index
    %c0_12 = arith.constant 0 : index
    %28 = vector.load %arg4[%c0_10, %c0_11, %c0_12] : memref<1x1x128xf32, #tpu.memory_space<vmem>>, vector<1x1x128xf32>
    %29 = vector.shape_cast %27 : vector<1x8xf32> to vector<1x1x8xf32>
    %cst_13 = arith.constant dense<0.000000e+00> : vector<1xf32>
    %30 = vector.multi_reduction <add>, %29, %cst_13 [1, 2] : vector<1x1x8xf32> to vector<1xf32>
    %31 = vector.shape_cast %30 : vector<1xf32> to vector<1x1x1xf32>
    %32 = vector.extract %31[0, 0, 0] : f32 from vector<1x1x1xf32>
    %33 = vector.broadcast %32 : f32 to vector<1x1x128xf32>
    %34 = arith.addf %28, %33 : vector<1x1x128xf32>
    %c0_14 = arith.constant 0 : index
    %c0_15 = arith.constant 0 : index
    %c0_16 = arith.constant 0 : index
    %35 = vector.load %arg4[%c0_14, %c0_15, %c0_16] : memref<1x1x128xf32, #tpu.memory_space<vmem>>, vector<1x1x128xf32>
    tpu.vector_store %arg4[%c0_14, %c0_15, %c0_16], %34 {strides = array<i32>} : memref<1x1x128xf32, #tpu.memory_space<vmem>>, vector<1x1x128xf32>,
    return
  }
  func.func @transform_0(%arg0: i32, %arg1: i32) -> (i32, i32, i32) {
    %c0_i32 = arith.constant 0 : i32
    %c0_i32_0 = arith.constant 0 : i32
    return %arg0, %c0_i32, %arg1 : i32, i32, i32
  }
  func.func @transform_1(%arg0: i32, %arg1: i32) -> (i32, i32, i32) {
    %c0_i32 = arith.constant 0 : i32
    %c0_i32_0 = arith.constant 0 : i32
    return %arg0, %c0_i32, %arg1 : i32, i32, i32
  }
  func.func @transform_2(%arg0: i32, %arg1: i32) -> (i32, i32, i32) {
    %c0_i32 = arith.constant 0 : i32
    %c0_i32_0 = arith.constant 0 : i32
    %c0_i32_1 = arith.constant 0 : i32
    return %arg0, %c0_i32, %c0_i32_0 : i32, i32, i32
  }
}

</mosaic_0001>

<bundles_post_ra>
// kernel: tpu_custom_call.1
= control target key start
LH: loop header
LB: loop body
LE: loop exit
PB: predicated region body
PF: predicated region fallthrough
CT: control target
= control target key end

     0   :  { %7 = vsyncpa [#allocation3], 0  ;;  %s671_s0 = inlined_call_operand.vmem [shape: f32[2,32,8], index: 0, kind: input, shape index: {}]   ;;  %s672_s1 = inlined_call_operand.vmem [shape: s32[2,1,8], index: 1, kind: input, shape index: {}]   ;;  %s673_s2 = inlined_call_operand.hbm [shape: f32[2,1,128], index: 2, kind: output, shape index: {}]  }
   0x1   :  { %9 = vsyncpa [#allocation3 + $0x1], 0  ;;  %s555_s9 = smov 0   ;;  %s557_s10 = smov 0  }
   0x2   :  { %s559_s11 = smov 0   ;;  %s561_s12 = smov 0  }
   0x3   :  { %s563_s13 = smov 0   ;;  %s565_s14 = smov 0  }
   0x4 LB: > { %s380_s15 = sadd.s32 4294967295, %s537_s14   ;;  %s381_s16 = sadd.s32 4294967294, %s537_s14   ;;  %s537_s14 = sphi %s565_s14, %s15_s14   ;;  %s533_s13 = sphi %s563_s13, %s680_s13   ;;  %s529_s12 = sphi %s561_s12, %s679_s12   ;;  %s525_s11 = sphi %s559_s11, %s678_s11   ;;  %s521_s10 = sphi %s557_s10, %s677_s10   ;;  %s517_s9 = sphi %s555_s9, %s676_s9  }
   0x5   : > { %s27_s17 = sadd.s32 1, %s533_s13  ;;  %s90_s18 = sadd.s32 1, %s525_s11 }
   0x6   : > { %p29_p0 = scmp.ge.s32.totalorder %s27_s17, 2  ;;  %p100_p1 = scmp.ne.s32.totalorder %s525_s11, %s521_s10 }
   0x7   : > { %p101_p2 = scmp.eq.s32.totalorder %s380_s15, 1  ;;  %p106_p3 = scmp.ne.s32.totalorder %s521_s10, %s517_s9 }
   0x8   : > { %s682_s17 = smov (%p29_p0, %s27_s17), 0  ;;  %p107_p5 = scmp.eq.s32.totalorder %s381_s16, 1 }
   0x9   : > { %p595_p4 = por %p101_p2, %p100_p1  ;;  %s87_s20 = ssub.s32 %s533_s13, %s682_s17 }
   0xa   : > { %p384_p6 = scmp.ge.s32.totalorder %s537_s14, 1  ;;  %p88_p7 = scmp.eq.s32.totalorder %s87_s20, 0 }
   0xb   : > { %p602_p8 = por %p107_p5, %p106_p3  ;;  %p145_p9 = scmp.lt.s32.totalorder %s537_s14, 3 }
   0xc   : > { %s608_s22 = scalar_select %p88_p7, %s525_s11, %s90_s18  }
   0xd   : > { %p146_p10 = pnand %p384_p6, %p145_p9 }
   0xe   : > { %p175_p11 = scmp.lt.s32.totalorder (!%p146_p10), %s529_s12, 1  ;;  %s173_s3 = sand.u32 (!%p146_p10), 1, %s521_s10  }
   0xf   : > { %149 = sbr.rel (%p146_p10) target bundleno = 273 (0x111), region = 28  ;;  %s174_s4 = scalar_lea.vmem (!%p146_p10), [#allocation2], %s173_s3 }
  0x10   : > { %s295_s7 = scalar_lea.hbm (!%p146_p10), %s673_s2, %s529_s12  ;;  %s297_s8 = sshll.u32 (!%p146_p10), %s174_s4, 4  ;;  %s298_s8 = int_to_ptr.vmem [resolvable:$true] %s297_s8 }
  0x11   : > { %s299_s15 = sshll.u32 (!%p146_p10), %s295_s7, 4  ;;  %s287_s18 = scalar_lea.sflag (!%p146_p10), [#allocation3], %s173_s3  ;;  %s300_s15 = int_to_ptr.hbm [resolvable:$true] %s299_s15 }
  0x12   : > { %s473_s20 = sshra.s32 (!%p146_p10), %s300_s15, 4  ;;  %s474_s20 = int_to_ptr.hbm [resolvable:$true] %s473_s20 }
  0x13   : > { %p480_p1 = scmp.lt.s32.totalorder (!%p146_p10), %s474_s20, %s673_s2 }
  0x14   : > { %s176_s23 = scalar_select %p175_p11, %s529_s12, 1  ;;  %vm199_vm0 = vcmask 64512   ;;  %v241_v10 = vlaneseq  ;;  %vm272_vm6 = vcmask 57344  }
  0x15   : > { %s479_s12 = scalar_lea.hbm %s673_s2, 2 }
  0x16   : > { %s389_s24 = sshll.u32 %s176_s23, 5  ;;  %v242_v13 = vshrl.u32 %v241_v10, 7  ;;  %s622_s30 = scalar_lea.vmem %s672_s1, %s176_s23 }
  0x17   : > { %s182_s27 = scalar_lea.vmem %s671_s0, %s389_s24  ;;  %v448_v17 = vld [vmem:[%s622_s30] ss:$0 sm:$0xff]  ;;  %s475_s23 = scalar_lea.hbm %s474_s20, 1 }
  0x18   : > { %v194_v0 = vld [vmem:[%s182_s27] sm:$0xff]  ;;  %v195_v1 = vld [vmem:[%s182_s27 + $0x8] sm:$0xff]  ;;  %v196_v2 = vld [vmem:[%s182_s27 + $0x10] sm:$0xff]  ;;  %v243_v16 = vadd.s32 8, %v242_v13  ;;  %vm247_vm1 = vcmp.eq.s32.totalorder %v242_v13, %v448_v17  ;;  %v244_v20 = vadd.s32 16, %v242_v13  ;;  %v245_v28 = vadd.s32 24, %v242_v13  ;;  %p476_p12 = scmp.ne.s32.totalorder %s474_s20, %s475_s23  ;;  %p481_p2 = scmp.lt.s32.totalorder %s479_s12, %s475_s23 }
  0x19   : > { %v197_v3 = vld [vmem:[%s182_s27 + $0x18] sm:$0xff]  ;;  %v200_v4 = vsel %vm199_vm0, %v194_v0, -inf  ;;  %v201_v5 = vsel %vm199_vm0, %v195_v1, -inf  ;;  %v202_v6 = vsel %vm199_vm0, %v196_v2, -inf  ;;  %v251_v22 = vsel %vm247_vm1, %v194_v0, 0.0 }
  0x1a   : > { %v203_v7 = vsel %vm199_vm0, %v197_v3, -inf  ;;  %v204_v8 = vmax.f32 %v200_v4, %v201_v5  ;;  %vm248_vm2 = vcmp.eq.s32.totalorder %v243_v16, %v448_v17  ;;  %vm249_vm3 = vcmp.eq.s32.totalorder %v244_v20, %v448_v17  ;;  %p477_p13 = pnand %p476_p12, %p595_p4  ;;  %p482_p3 = por %p481_p2, %p480_p1 }
  0x1b   : > { %v205_v9 = vmax.f32 %v202_v6, %v203_v7  ;;  %v252_v23 = vsel %vm248_vm2, %v195_v1, 0.0  ;;  %v255_v33 = vsel %vm199_vm0, %v251_v22, 0.0  ;;  %v253_v35 = vsel %vm249_vm3, %v196_v2, 0.0 }
  0x1c   : > { %v256_v34 = vsel %vm199_vm0, %v252_v23, 0.0  ;;  %vm250_vm4 = vcmp.eq.s32.totalorder %v245_v28, %v448_v17  ;;  %v258_v37 = vsel %vm199_vm0, %v253_v35, 0.0  ;;  %p478_p0 = pneg %p477_p13 }
  0x1d   : > { %v206_v11 = vmax.f32 %v204_v8, %v205_v9  ;;  %v257_v36 = vadd.f32 %v256_v34, %v255_v33  ;;  %v254_v38 = vsel %vm250_vm4, %v197_v3, 0.0  ;;  %v539_v8 = vmov 0.0  }
  0x1e   : > { %v260_v43 = vsel %vm199_vm0, %v254_v38, 0.0  ;;  %193 = vst [vmem:[%s174_s4] sm:$0x1] %v539_v8  ;;  %p483_p5 = pnand %p482_p3, %p478_p0 }
  0x1f   : > { %v207_v12 = vrot.slane %v206_v11, 4  ;;  %v259_v40 = vadd.f32 %v258_v37, %v257_v36 }
  0x21   : > { %v208_v14 = vmax.f32 %v206_v11, %v207_v12  ;;  %v261_v50 = vadd.f32 %v260_v43, %v259_v40 }
  0x23   : > { %v209_v15 = vrot.slane %v208_v14, 2  ;;  %v262_v53 = vrot.slane %v261_v50, 4 }
  0x25   : > { %v210_v18 = vmax.f32 %v208_v14, %v209_v15  ;;  %v263_v56 = vadd.f32 %v262_v53, %v261_v50  ;;  %v271_v16 = vld [vmem:[%s174_s4] sm:$0x1] }
  0x27   : > { %v211_v19 = vrot.slane %v210_v18, 1  ;;  %v264_v59 = vrot.slane %v263_v56, 2 }
  0x29   : > { %v212_v21 = vmax.f32 %v210_v18, %v211_v19  ;;  %v265_v62 = vadd.f32 %v264_v59, %v263_v56 }
  0x2b   : > { %v213_v24 = vsub.f32 %v194_v0, %v212_v21  ;;  %v214_v25 = vsub.f32 %v195_v1, %v212_v21  ;;  %v215_v26 = vsub.f32 %v196_v2, %v212_v21  ;;  %v216_v27 = vsub.f32 %v197_v3, %v212_v21  ;;  %v198_v1 = vld [vmem:[%s622_s30] sm:$0x1] }
  0x2c   : > { %v266_v63 = vrot.slane %v265_v62, 1  ;;  %vm268_vm5 = vcmp.eq.s32.totalorder %v198_v1, 4294967295 }
  0x2d   : > { %v217_v29 = vmul.f32 1.442695, %v213_v24  ;;  %v219_v30 = vmul.f32 1.442695, %v214_v25  ;;  %v221_v31 = vmul.f32 1.442695, %v215_v26 }
  0x2e   : > { %v223_v32 = vmul.f32 1.442695, %v216_v27  ;;  %v267_v3 = vadd.f32 %v266_v63, %v265_v62 }
  0x2f   : > { %449 = vpow2.f32 %v217_v29 }
  0x30   : > { %451 = vpow2.f32 %v219_v30 }
  0x31   : > { %453 = vpow2.f32 %v221_v31 }
  0x32   : > { %455 = vpow2.f32 %v223_v32 }
  0x35   : > { %v450_v39 = vpop.eup %449 }
  0x36   : > { %v452_v41 = vpop.eup %451  ;;  %v225_v42 = vsel %vm199_vm0, %v450_v39, 0.0 }
  0x37   : > { %v454_v44 = vpop.eup %453  ;;  %v226_v45 = vsel %vm199_vm0, %v452_v41, 0.0 }
  0x38   : > { %v456_v46 = vpop.eup %455  ;;  %v227_v47 = vadd.f32 %v226_v45, %v225_v42  ;;  %v228_v48 = vsel %vm199_vm0, %v454_v44, 0.0 }
  0x39   : > { %v230_v49 = vsel %vm199_vm0, %v456_v46, 0.0 }
  0x3a   : > { %v229_v51 = vadd.f32 %v228_v48, %v227_v47 }
  0x3c   : > { %v231_v52 = vadd.f32 %v230_v49, %v229_v51 }
  0x3e   : > { %v232_v54 = vrot.slane %v231_v52, 4 }
  0x40   : > { %v233_v55 = vadd.f32 %v232_v54, %v231_v52 }
  0x42   : > { %v234_v57 = vrot.slane %v233_v55, 2 }
  0x44   : > { %v235_v58 = vadd.f32 %v234_v57, %v233_v55 }
  0x46   : > { %v236_v60 = vrot.slane %v235_v58, 1 }
  0x48   : > { %v237_v61 = vadd.f32 %v236_v60, %v235_v58 }
  0x4a   : > { %457 = vlog2.f32 %v237_v61 }
  0x50   : > { %v458_v0 = vpop.eup %457 }
  0x51   : > { %v239_v2 = vmul.f32 0.6931472, %v458_v0 }
  0x53   : > { %v240_v4 = vadd.f32 %v239_v2, %v212_v21 }
  0x55   : > { %v269_v5 = vsub.f32 %v240_v4, %v267_v3 }
  0x57   : > { %v270_v6 = vsel %vm268_vm5, 0.0, %v269_v5 }
  0x58   : > { %v273_v7 = vsel %vm272_vm6, %v270_v6, 0.0 }
  0x59   : > { %274 = vadd.xlane.f32.xlu0 %v273_v7 }
  0xcc   : > { %v275_v9 = vpop.xlane.xlu0 %274 }
  0xcd   : > { %v276_v10 = vrot.slane %v275_v9, 4 }
  0xcf   : > { %v277_v11 = vadd.f32 %v276_v10, %v275_v9 }
  0xd1   : > { %v278_v12 = vrot.slane %v277_v11, 2 }
  0xd3   : > { %v279_v13 = vadd.f32 %v278_v12, %v277_v11 }
  0xd5   : > { %v280_v14 = vrot.slane %v279_v13, 1 }
  0xd7   : > { %v281_v15 = vadd.f32 %v280_v14, %v279_v13 }
  0xd9   : > { %390 = vpush %v281_v15 }
 0x10a   : > { %s391_s16 = spop %390 }
 0x10b   : > { %v283_v17 = vstv %s391_s16 }
 0x10c   : > { %v284_v18 = vadd.f32 %v283_v17, %v271_v16 }
 0x10e   : > { %285 = vst [vmem:[%s174_s4] sm:$0x1] %v284_v18 }
 0x10f   : > { %486 = shalt.err (!%p483_p5)
}
 0x110   : > { %392 = dma.vmem_to_hbm [thread:$0]  (%p595_p4), %s298_s8, 16, %s300_s15, %s287_s18  }
 0x111 PF: > { %p398_p6 = scmp.ge.s32.totalorder %s537_s14, 2  ;;  %s311_s28 = sand.u32 1, %s517_s9  }
 0x112   : > { %s312_s29 = scalar_lea.sflag [#allocation3], %s311_s28 }
 0x113   : > { %p395_p7 = pnand %p398_p6, %p602_p8 }
 0x115   : > { %p396_p9 = pneg %p395_p7 }
 0x117   : > { %512 = dma.done.wait (%p396_p9), %s312_s29, 16  }
 0x118   : > { %514 = vsyncadd (%p396_p9), %s312_s29, 4294967280  ;;  %s15_s14 = sadd.s32 1, %s537_s14   ;;  %s676_s9 = smov %s521_s10 }
 0x119   : > { %p12_p10 = scmp.ge.s32.totalorder %s15_s14, 4   ;;  %s677_s10 = smov %s525_s11 }
 0x11a   : > { %s678_s11 = smov %s608_s22  ;;  %s679_s12 = smov %s533_s13 }
 0x11b   : > { %s680_s13 = smov %s682_s17  ;;  %14 = sbr.rel (!%p12_p10) target bundleno = 4 (0x4), region = 70 }
 0x120   :  { %317 = vsyncpa [#allocation3], 1 }
 0x121   :  { %319 = vsyncpa [#allocation3 + $0x1], 1 }

</bundles_post_ra>
